<compile_context>
chip_gen: v6e
topology: v6e:2x2x1
jax: 0.10.0
libtpu: 0.0.40
codegen_flags: <defaults>
</compile_context>

<pallas_src>
import functools

import jax
import jax.numpy as jnp
from jax import lax
from jax.experimental import pallas as pl
from jax.experimental.pallas import tpu as pltpu

LN_EPS = 1e-5
PAD_IDX = 1


def _round_up(x, m):
    return (x + m - 1) // m * m


def _emb_ln_kernel(wid_ref,                        # scalar prefetch (SMEM): flat token ids, (n_pad,)
                   word_hbm,                       # word embedding table, left in HBM (pl.ANY)
                   pid_ref,                        # (TQ, 1) int32 position ids for this block (VMEM)
                   pos_ref,                        # (max_pos, H) position table, resident in VMEM
                   bias_ref, gamma_ref, beta_ref,  # (1, H) f32: tok_type_emb[0], LN gamma, LN beta
                   out_ref,                        # (TQ, H) output tile
                   wbuf, wsem,                     # scratch: (2, TQ, H) word rows, DMA sems (2,)
                   *, tq):
    i = pl.program_id(0)
    nb = pl.num_programs(0)
    slot = i % 2

    def issue_word_gather(block, buf_slot):
        base = block * tq

        def body(t, carry):
            w = wid_ref[base + t]
            pltpu.make_async_copy(
                word_hbm.at[pl.ds(w, 1)],           # (1, H) row in HBM
                wbuf.at[buf_slot, pl.ds(t, 1)],     # (1, H) destination row in the slot buffer
                wsem.at[buf_slot],
            ).start()
            return carry

        lax.fori_loop(0, tq, body, 0)

    # Prime the pipeline with this block's word rows on the first step.
    @pl.when(i == 0)
    def _():
        issue_word_gather(0, 0)

    # Prefetch the next block's word rows while this block is processed.
    @pl.when(i + 1 < nb)
    def _():
        issue_word_gather(i + 1, (i + 1) % 2)

    # Position-embedding gather as a one-hot matmul on the MXU (runs while the word-row HBM DMAs
    # are in flight; MXU is otherwise idle in this kernel).
    max_pos = pos_ref.shape[0]
    pid_v = pid_ref[...]                                            # (TQ, 1) int32
    iota = lax.broadcasted_iota(jnp.int32, (tq, max_pos), 1)
    onehot = (pid_v == iota).astype(jnp.float32)                    # (TQ, max_pos)
    pos_rows = jnp.dot(onehot, pos_ref[...].astype(jnp.float32),
                       preferred_element_type=jnp.float32)          # (TQ, H)

    # Wait for all TQ word-row DMAs of this block: they all signal wsem[slot], so one wait sized
    # to the whole slot buffer consumes every completion.
    pltpu.make_async_copy(wbuf.at[slot], wbuf.at[slot], wsem.at[slot]).wait()

    x = wbuf[slot].astype(jnp.float32) + pos_rows + bias_ref[...]   # (TQ, H); bias broadcasts
    mean = jnp.mean(x, axis=-1, keepdims=True)
    xc = x - mean
    var = jnp.mean(xc * xc, axis=-1, keepdims=True)
    y = xc * lax.rsqrt(var + LN_EPS) * gamma_ref[...] + beta_ref[...]
    out_ref[...] = y.astype(out_ref.dtype)


def roberta_embeddings_pallas(input_ids, extended_attention_mask,
                              word_emb, pos_emb, tok_type_emb, ln_gamma, ln_beta,
                              tokens_per_block=256):
    B, S = input_ids.shape
    H = word_emb.shape[1]
    max_pos = pos_emb.shape[0]
    n_tok = B * S

    # RoBERTa position ids (scalar glue; stays in plain JAX).
    mask = (input_ids != PAD_IDX).astype(jnp.int32)
    position_ids = jnp.cumsum(mask, axis=1) * mask + PAD_IDX

    # Tokens per grid step: multiple of 8, capped by the (padded) token count.
    tq = min(tokens_per_block, _round_up(n_tok, 8))
    n_pad = _round_up(n_tok, tq)
    n_blocks = n_pad // tq

    # Padded flat id arrays (pad with 0, a valid table index; padded rows are sliced off).
    wid = jnp.pad(input_ids.reshape(-1).astype(jnp.int32), (0, n_pad - n_tok))
    pid2d = jnp.pad(position_ids.reshape(-1).astype(jnp.int32),
                    (0, n_pad - n_tok)).reshape(n_pad, 1)

    # Invariants hoisted out of the kernel loop (precast to f32 once).
    bias_row = tok_type_emb[0].astype(jnp.float32).reshape(1, H)   # token_type_ids == 0 everywhere
    gamma2d = ln_gamma.astype(jnp.float32).reshape(1, H)
    beta2d = ln_beta.astype(jnp.float32).reshape(1, H)

    grid_spec = pltpu.PrefetchScalarGridSpec(
        num_scalar_prefetch=1,
        grid=(n_blocks,),
        in_specs=[
            pl.BlockSpec(memory_space=pl.ANY),                       # word table stays in HBM
            pl.BlockSpec((tq, 1), lambda i, wid: (i, 0)),            # per-block position ids
            pl.BlockSpec((max_pos, H), lambda i, wid: (0, 0)),       # pos table resident in VMEM
            pl.BlockSpec((1, H), lambda i, wid: (0, 0)),             # token-type-0 bias row
            pl.BlockSpec((1, H), lambda i, wid: (0, 0)),             # LN gamma
            pl.BlockSpec((1, H), lambda i, wid: (0, 0)),             # LN beta
        ],
        out_specs=pl.BlockSpec((tq, H), lambda i, wid: (i, 0)),
        scratch_shapes=[
            pltpu.VMEM((2, tq, H), word_emb.dtype),    # double-buffered word-row gather
            pltpu.SemaphoreType.DMA((2,)),
        ],
    )

    out_flat = pl.pallas_call(
        functools.partial(_emb_ln_kernel, tq=tq),
        out_shape=jax.ShapeDtypeStruct((n_pad, H), word_emb.dtype),
        grid_spec=grid_spec,
        # Cross-step prefetch of the word-row gather requires sequential grid execution.
        # TODO(synk): on v7x, add an outer "parallel" grid axis over token blocks so both
        # TensorCores are used (priming the gather per outer index instead of cross-step prefetch).
        compiler_params=pltpu.CompilerParams(dimension_semantics=("arbitrary",)),
    )(wid, word_emb, pid2d, pos_emb, bias_row, gamma2d, beta2d)

    embeddings = out_flat[:n_tok].reshape(B, S, H)
    # EmbWrapper.forward returns the attention mask unchanged alongside the embeddings.
    return embeddings, extended_attention_mask


def _reference(input_ids, word_emb, pos_emb, tok_type_emb, ln_gamma, ln_beta):
    mask = (input_ids != PAD_IDX).astype(jnp.int32)
    position_ids = jnp.cumsum(mask, axis=1) * mask + PAD_IDX
    x = word_emb[input_ids] + pos_emb[position_ids] + tok_type_emb[0][None, None, :]
    mean = jnp.mean(x, axis=-1, keepdims=True)
    var = jnp.mean((x - mean) ** 2, axis=-1, keepdims=True)
    return (x - mean) * lax.rsqrt(var + LN_EPS) * ln_gamma + ln_beta


if __name__ == "__main__":
    key = jax.random.PRNGKey(0)
    B, S, H = 2, 8, 128            # small, lane-aligned hidden size
    VOCAB = 64
    MAX_POS = 16                   # >= S + PAD_IDX + 1 (positions start at PAD_IDX + 1)
    N_TOK_TYPES = 2

    k0, k1, k2, k3, k4, k5 = jax.random.split(key, 6)
    input_ids = jax.random.randint(k0, (B, S), 0, VOCAB, dtype=jnp.int32)
    extended_attention_mask = jnp.zeros((B, 1, 1, S), dtype=jnp.float32)

    # Deterministic synthetic parameters (nn.Embedding padding_idx rows zeroed for fidelity).
    word_emb = 0.02 * jax.random.normal(k1, (VOCAB, H), dtype=jnp.float32)
    word_emb = word_emb.at[PAD_IDX].set(0.0)
    pos_emb = 0.02 * jax.random.normal(k2, (MAX_POS, H), dtype=jnp.float32)
    pos_emb = pos_emb.at[PAD_IDX].set(0.0)
    tok_type_emb = 0.02 * jax.random.normal(k3, (N_TOK_TYPES, H), dtype=jnp.float32)
    ln_gamma = 1.0 + 0.01 * jax.random.normal(k4, (H,), dtype=jnp.float32)
    ln_beta = 0.01 * jax.random.normal(k5, (H,), dtype=jnp.float32)

    out, mask_out = roberta_embeddings_pallas(
        input_ids, extended_attention_mask,
        word_emb, pos_emb, tok_type_emb, ln_gamma, ln_beta)
    out = jax.block_until_ready(out)
    mask_out = jax.block_until_ready(mask_out)

    ref = _reference(input_ids, word_emb, pos_emb, tok_type_emb, ln_gamma, ln_beta)
    assert out.shape == (B, S, H)
    assert mask_out.shape == extended_attention_mask.shape
    assert jnp.allclose(out, ref, atol=1e-5, rtol=1e-5), "mismatch vs reference"
    assert jnp.array_equal(mask_out, extended_attention_mask)

    print("KERNEL_OK")
</pallas_src>

<mosaic_0001>
module attributes {stable_mosaic.version = 11 : i64} {
  func.func @_emb_ln_kernel(%arg0: i32, %arg1: memref<16xi32, #tpu.memory_space<smem>>, %arg2: memref<64x128xf32, #tpu.memory_space<any>>, %arg3: memref<16x1xi32, #tpu.memory_space<vmem>>, %arg4: memref<16x128xf32, #tpu.memory_space<vmem>>, %arg5: memref<1x128xf32, #tpu.memory_space<vmem>>, %arg6: memref<1x128xf32, #tpu.memory_space<vmem>>, %arg7: memref<1x128xf32, #tpu.memory_space<vmem>>, %arg8: memref<16x128xf32, #tpu.memory_space<vmem>>, %arg9: memref<2x16x128xf32, #tpu.memory_space<vmem>>, %arg10: memref<2x!tpu.dma_semaphore, #tpu.memory_space<semaphore_mem>>) attributes {dimension_semantics = [#tpu.dimension_semantics<arbitrary>], iteration_bounds = array<i64: 1>, scalar_prefetch = 1 : i64, scratch_operands = 2 : i64, tpu.core_type = #tpu.core_type<tc>, window_params = [{}, {transform_indices = @transform_1, window_bounds = array<i64: 16, 1>}, {pipeline_mode = #tpu.pipeline_mode<synchronous>, transform_indices = @transform_2, window_bounds = array<i64: 16, 128>}, {pipeline_mode = #tpu.pipeline_mode<synchronous>, transform_indices = @transform_3, window_bounds = array<i64: 1, 128>}, {pipeline_mode = #tpu.pipeline_mode<synchronous>, transform_indices = @transform_4, window_bounds = array<i64: 1, 128>}, {pipeline_mode = #tpu.pipeline_mode<synchronous>, transform_indices = @transform_5, window_bounds = array<i64: 1, 128>}, {transform_indices = @transform_6, window_bounds = array<i64: 16, 128>}]} {
    %c2_i32 = arith.constant 2 : i32
    %c0_i32 = arith.constant 0 : i32
    %0 = arith.cmpi eq, %c2_i32, %c0_i32 : i32
    %c1_i32 = arith.constant 1 : i32
    %1 = arith.select %0, %c1_i32, %c2_i32 : i32
    %2 = arith.remsi %arg0, %1 : i32
    %c0_i32_0 = arith.constant 0 : i32
    %3 = arith.cmpi ne, %2, %c0_i32_0 : i32
    %c0_i32_1 = arith.constant 0 : i32
    %4 = arith.cmpi slt, %2, %c0_i32_1 : i32
    %c0_i32_2 = arith.constant 0 : i32
    %5 = arith.cmpi slt, %1, %c0_i32_2 : i32
    %6 = arith.xori %4, %5 : i1
    %7 = arith.andi %6, %3 : i1
    %8 = arith.addi %2, %1 : i32
    %9 = arith.select %7, %8, %2 : i32
    %c0_i32_3 = arith.constant 0 : i32
    %10 = arith.cmpi eq, %arg0, %c0_i32_3 : i32
    %11 = arith.extui %10 : i1 to i32
    %c0_i32_4 = arith.constant 0 : i32
    %12 = arith.cmpi ne, %11, %c0_i32_4 : i32
    scf.if %12 {
      %c0_i32_30 = arith.constant 0 : i32
      %c16_i32 = arith.constant 16 : i32
      %61 = arith.addi %c0_i32_30, %c16_i32 : i32
      %c1_i32_31 = arith.constant 1 : i32
      scf.for %arg11 = %c0_i32_30 to %61 step %c1_i32_31  : i32 {
        %c0_i32_33 = arith.constant 0 : i32
        %62 = arith.addi %c0_i32_33, %arg11 : i32
        %63 = arith.index_cast %62 : i32 to index
        %64 = memref.load %arg1[%63] : memref<16xi32, #tpu.memory_space<smem>>
        %c0_i32_34 = arith.constant 0 : i32
        %c0_i32_35 = arith.constant 0 : i32
        %c0_i32_36 = arith.constant 0 : i32
        %65 = tpu.memref_slice %arg2[%64, %c0_i32_36] : memref<64x128xf32, #tpu.memory_space<any>> -> memref<1x128xf32, #tpu.memory_space<any>>
        %c0_i32_37 = arith.constant 0 : i32
        %66 = tpu.memref_slice %arg9[%c0_i32_34, %arg11, %c0_i32_37] : memref<2x16x128xf32, #tpu.memory_space<vmem>> -> memref<1x1x128xf32, #tpu.memory_space<vmem>>
        %67 = tpu.memref_squeeze %66 : memref<1x1x128xf32, #tpu.memory_space<vmem>> -> memref<1x128xf32, #tpu.memory_space<vmem>>
        %68 = tpu.memref_slice %arg10[%c0_i32_35] : memref<2x!tpu.dma_semaphore, #tpu.memory_space<semaphore_mem>> -> memref<1x!tpu.dma_semaphore, #tpu.memory_space<semaphore_mem>>
        %69 = tpu.memref_squeeze %68 : memref<1x!tpu.dma_semaphore, #tpu.memory_space<semaphore_mem>> -> memref<!tpu.dma_semaphore, #tpu.memory_space<semaphore_mem>>
        tpu.enqueue_dma source(%65 : memref<1x128xf32, #tpu.memory_space<any>>) target(%67 : memref<1x128xf32, #tpu.memory_space<vmem>>) target_semaphore(%69 : memref<!tpu.dma_semaphore, #tpu.memory_space<semaphore_mem>>)
      }
      %c16_i32_32 = arith.constant 16 : i32
    } else {
    }
    %c1_i32_5 = arith.constant 1 : i32
    %13 = arith.addi %arg0, %c1_i32_5 : i32
    %c1_i32_6 = arith.constant 1 : i32
    %14 = arith.cmpi slt, %13, %c1_i32_6 : i32
    %15 = arith.extui %14 : i1 to i32
    %c0_i32_7 = arith.constant 0 : i32
    %16 = arith.cmpi ne, %15, %c0_i32_7 : i32
    scf.if %16 {
      %c1_i32_30 = arith.constant 1 : i32
      %61 = arith.addi %arg0, %c1_i32_30 : i32
      %c1_i32_31 = arith.constant 1 : i32
      %62 = arith.addi %arg0, %c1_i32_31 : i32
      %c2_i32_32 = arith.constant 2 : i32
      %c0_i32_33 = arith.constant 0 : i32
      %63 = arith.cmpi eq, %c2_i32_32, %c0_i32_33 : i32
      %c1_i32_34 = arith.constant 1 : i32
      %64 = arith.select %63, %c1_i32_34, %c2_i32_32 : i32
      %65 = arith.remsi %62, %64 : i32
      %c0_i32_35 = arith.constant 0 : i32
      %66 = arith.cmpi ne, %65, %c0_i32_35 : i32
      %c0_i32_36 = arith.constant 0 : i32
      %67 = arith.cmpi slt, %65, %c0_i32_36 : i32
      %c0_i32_37 = arith.constant 0 : i32
      %68 = arith.cmpi slt, %64, %c0_i32_37 : i32
      %69 = arith.xori %67, %68 : i1
      %70 = arith.andi %69, %66 : i1
      %71 = arith.addi %65, %64 : i32
      %72 = arith.select %70, %71, %65 : i32
      %c16_i32 = arith.constant 16 : i32
      %73 = arith.muli %61, %c16_i32 : i32
      %c0_i32_38 = arith.constant 0 : i32
      %c16_i32_39 = arith.constant 16 : i32
      %74 = arith.addi %c0_i32_38, %c16_i32_39 : i32
      %c1_i32_40 = arith.constant 1 : i32
      scf.for %arg11 = %c0_i32_38 to %74 step %c1_i32_40  : i32 {
        %75 = arith.addi %73, %arg11 : i32
        %76 = arith.index_cast %75 : i32 to index
        %77 = memref.load %arg1[%76] : memref<16xi32, #tpu.memory_space<smem>>
        %c0_i32_42 = arith.constant 0 : i32
        %78 = tpu.memref_slice %arg2[%77, %c0_i32_42] : memref<64x128xf32, #tpu.memory_space<any>> -> memref<1x128xf32, #tpu.memory_space<any>>
        %c0_i32_43 = arith.constant 0 : i32
        %79 = tpu.memref_slice %arg9[%72, %arg11, %c0_i32_43] : memref<2x16x128xf32, #tpu.memory_space<vmem>> -> memref<1x1x128xf32, #tpu.memory_space<vmem>>
        %80 = tpu.memref_squeeze %79 : memref<1x1x128xf32, #tpu.memory_space<vmem>> -> memref<1x128xf32, #tpu.memory_space<vmem>>
        %81 = tpu.memref_slice %arg10[%72] : memref<2x!tpu.dma_semaphore, #tpu.memory_space<semaphore_mem>> -> memref<1x!tpu.dma_semaphore, #tpu.memory_space<semaphore_mem>>
        %82 = tpu.memref_squeeze %81 : memref<1x!tpu.dma_semaphore, #tpu.memory_space<semaphore_mem>> -> memref<!tpu.dma_semaphore, #tpu.memory_space<semaphore_mem>>
        tpu.enqueue_dma source(%78 : memref<1x128xf32, #tpu.memory_space<any>>) target(%80 : memref<1x128xf32, #tpu.memory_space<vmem>>) target_semaphore(%82 : memref<!tpu.dma_semaphore, #tpu.memory_space<semaphore_mem>>)
      }
      %c16_i32_41 = arith.constant 16 : i32
    } else {
    }
    %c0 = arith.constant 0 : index
    %c0_8 = arith.constant 0 : index
    %17 = vector.load %arg3[%c0, %c0_8] : memref<16x1xi32, #tpu.memory_space<vmem>>, vector<16x1xi32>
    %18 = tpu.iota {dimensions = array<i32: 1>} : vector<16x16xi32>
    %19 = vector.broadcast %17 : vector<16x1xi32> to vector<16x16xi32>
    %20 = arith.cmpi eq, %19, %18 : vector<16x16xi32>
    %21 = arith.extui %20 : vector<16x16xi1> to vector<16x16xi32>
    %22 = arith.sitofp %21 : vector<16x16xi32> to vector<16x16xf32>
    %c0_9 = arith.constant 0 : index
    %c0_10 = arith.constant 0 : index
    %23 = vector.load %arg4[%c0_9, %c0_10] : memref<16x128xf32, #tpu.memory_space<vmem>>, vector<16x128xf32>
    %cst = arith.constant dense<0.000000e+00> : vector<16x128xf32>
    %24 = tpu.matmul %22, %23, %cst {dimension_numbers = #tpu.dot_dimension_numbers<[1], [0], [0], [1], [0, 0, 1, 1], [], []>} : vector<16x16xf32>, vector<16x128xf32>, vector<16x128xf32> -> vector<16x128xf32>
    %c0_i32_11 = arith.constant 0 : i32
    %c0_i32_12 = arith.constant 0 : i32
    %25 = tpu.memref_slice %arg9[%9, %c0_i32_11, %c0_i32_12] : memref<2x16x128xf32, #tpu.memory_space<vmem>> -> memref<1x16x128xf32, #tpu.memory_space<vmem>>
    %26 = tpu.memref_squeeze %25 : memref<1x16x128xf32, #tpu.memory_space<vmem>> -> memref<16x128xf32, #tpu.memory_space<vmem>>
    %c0_i32_13 = arith.constant 0 : i32
    %c0_i32_14 = arith.constant 0 : i32
    %27 = tpu.memref_slice %arg9[%9, %c0_i32_13, %c0_i32_14] : memref<2x16x128xf32, #tpu.memory_space<vmem>> -> memref<1x16x128xf32, #tpu.memory_space<vmem>>
    %28 = tpu.memref_squeeze %27 : memref<1x16x128xf32, #tpu.memory_space<vmem>> -> memref<16x128xf32, #tpu.memory_space<vmem>>
    %29 = tpu.memref_slice %arg10[%9] : memref<2x!tpu.dma_semaphore, #tpu.memory_space<semaphore_mem>> -> memref<1x!tpu.dma_semaphore, #tpu.memory_space<semaphore_mem>>
    %30 = tpu.memref_squeeze %29 : memref<1x!tpu.dma_semaphore, #tpu.memory_space<semaphore_mem>> -> memref<!tpu.dma_semaphore, #tpu.memory_space<semaphore_mem>>
    tpu.wait_dma2 semaphore(%30 : memref<!tpu.dma_semaphore, #tpu.memory_space<semaphore_mem>>) src(%26 : memref<16x128xf32, #tpu.memory_space<vmem>>) dst(%28 : memref<16x128xf32, #tpu.memory_space<vmem>>)
    %31 = arith.index_cast %9 : i32 to index
    %c0_15 = arith.constant 0 : index
    %c0_16 = arith.constant 0 : index
    %32 = vector.load %arg9[%31, %c0_15, %c0_16] : memref<2x16x128xf32, #tpu.memory_space<vmem>>, vector<1x16x128xf32>
    %33 = vector.shape_cast %32 : vector<1x16x128xf32> to vector<16x128xf32>
    %34 = arith.addf %33, %24 : vector<16x128xf32>
    %c0_17 = arith.constant 0 : index
    %c0_18 = arith.constant 0 : index
    %35 = vector.load %arg5[%c0_17, %c0_18] : memref<1x128xf32, #tpu.memory_space<vmem>>, vector<1x128xf32>
    %36 = vector.broadcast %35 : vector<1x128xf32> to vector<16x128xf32>
    %37 = arith.addf %34, %36 : vector<16x128xf32>
    %cst_19 = arith.constant dense<0.000000e+00> : vector<16xf32>
    %38 = vector.multi_reduction <add>, %37, %cst_19 [1] : vector<16x128xf32> to vector<16xf32>
    %39 = vector.shape_cast %38 : vector<16xf32> to vector<16x1xf32>
    %cst_20 = arith.constant 1.280000e+02 : f32
    %40 = vector.broadcast %cst_20 : f32 to vector<16x1xf32>
    %41 = arith.divf %39, %40 : vector<16x1xf32>
    %42 = vector.broadcast %41 : vector<16x1xf32> to vector<16x128xf32>
    %43 = arith.subf %37, %42 : vector<16x128xf32>
    %44 = arith.mulf %43, %43 : vector<16x128xf32>
    %cst_21 = arith.constant dense<0.000000e+00> : vector<16xf32>
    %45 = vector.multi_reduction <add>, %44, %cst_21 [1] : vector<16x128xf32> to vector<16xf32>
    %46 = vector.shape_cast %45 : vector<16xf32> to vector<16x1xf32>
    %cst_22 = arith.constant 1.280000e+02 : f32
    %47 = vector.broadcast %cst_22 : f32 to vector<16x1xf32>
    %48 = arith.divf %46, %47 : vector<16x1xf32>
    %cst_23 = arith.constant 9.99999974E-6 : f32
    %49 = vector.broadcast %cst_23 : f32 to vector<16x1xf32>
    %50 = arith.addf %48, %49 : vector<16x1xf32>
    %51 = math.rsqrt %50 : vector<16x1xf32>
    %52 = vector.broadcast %51 : vector<16x1xf32> to vector<16x128xf32>
    %53 = arith.mulf %43, %52 : vector<16x128xf32>
    %c0_24 = arith.constant 0 : index
    %c0_25 = arith.constant 0 : index
    %54 = vector.load %arg6[%c0_24, %c0_25] : memref<1x128xf32, #tpu.memory_space<vmem>>, vector<1x128xf32>
    %55 = vector.broadcast %54 : vector<1x128xf32> to vector<16x128xf32>
    %56 = arith.mulf %53, %55 : vector<16x128xf32>
    %c0_26 = arith.constant 0 : index
    %c0_27 = arith.constant 0 : index
    %57 = vector.load %arg7[%c0_26, %c0_27] : memref<1x128xf32, #tpu.memory_space<vmem>>, vector<1x128xf32>
    %58 = vector.broadcast %57 : vector<1x128xf32> to vector<16x128xf32>
    %59 = arith.addf %56, %58 : vector<16x128xf32>
    %c0_28 = arith.constant 0 : index
    %c0_29 = arith.constant 0 : index
    %60 = vector.load %arg8[%c0_28, %c0_29] : memref<16x128xf32, #tpu.memory_space<vmem>>, vector<16x128xf32>
    tpu.vector_store %arg8[%c0_28, %c0_29], %59 {strides = array<i32>} : memref<16x128xf32, #tpu.memory_space<vmem>>, vector<16x128xf32>,
    return
  }
  func.func @transform_1(%arg0: i32, %arg1: memref<16xi32, #tpu.memory_space<smem>>) -> (i32, i32) {
    %c0_i32 = arith.constant 0 : i32
    %c0_i32_0 = arith.constant 0 : i32
    return %arg0, %c0_i32 : i32, i32
  }
  func.func @transform_2(%arg0: i32, %arg1: memref<16xi32, #tpu.memory_space<smem>>) -> (i32, i32) {
    %c0_i32 = arith.constant 0 : i32
    %c0_i32_0 = arith.constant 0 : i32
    %c0_i32_1 = arith.constant 0 : i32
    return %c0_i32, %c0_i32_0 : i32, i32
  }
  func.func @transform_3(%arg0: i32, %arg1: memref<16xi32, #tpu.memory_space<smem>>) -> (i32, i32) {
    %c0_i32 = arith.constant 0 : i32
    %c0_i32_0 = arith.constant 0 : i32
    %c0_i32_1 = arith.constant 0 : i32
    return %c0_i32, %c0_i32_0 : i32, i32
  }
  func.func @transform_4(%arg0: i32, %arg1: memref<16xi32, #tpu.memory_space<smem>>) -> (i32, i32) {
    %c0_i32 = arith.constant 0 : i32
    %c0_i32_0 = arith.constant 0 : i32
    %c0_i32_1 = arith.constant 0 : i32
    return %c0_i32, %c0_i32_0 : i32, i32
  }
  func.func @transform_5(%arg0: i32, %arg1: memref<16xi32, #tpu.memory_space<smem>>) -> (i32, i32) {
    %c0_i32 = arith.constant 0 : i32
    %c0_i32_0 = arith.constant 0 : i32
    %c0_i32_1 = arith.constant 0 : i32
    return %c0_i32, %c0_i32_0 : i32, i32
  }
  func.func @transform_6(%arg0: i32, %arg1: memref<16xi32, #tpu.memory_space<smem>>) -> (i32, i32) {
    %c0_i32 = arith.constant 0 : i32
    %c0_i32_0 = arith.constant 0 : i32
    return %arg0, %c0_i32 : i32, i32
  }
}

</mosaic_0001>

<bundles_post_ra>
// kernel: tpu_custom_call.1
= control target key start
LH: loop header
LB: loop body
LE: loop exit
PB: predicated region body
PF: predicated region fallthrough
CT: control target
= control target key end

     0   :  { %s523_s0 = inlined_call_operand.vmem [shape: s32[16], index: 0, kind: input, shape index: {}]   ;;  %s524_s1 = inlined_call_operand.hbm [shape: f32[64,128], index: 1, kind: input, shape index: {}]   ;;  %s525_s2 = inlined_call_operand.vmem [shape: s32[16,1], index: 2, kind: input, shape index: {}]   ;;  %s526_s3 = inlined_call_operand.vmem [shape: f32[16,128], index: 3, kind: input, shape index: {}]   ;;  %s527_s4 = inlined_call_operand.vmem [shape: f32[1,128], index: 4, kind: input, shape index: {}]   ;;  %s528_s5 = inlined_call_operand.vmem [shape: f32[1,128], index: 5, kind: input, shape index: {}]   ;;  %s529_s6 = inlined_call_operand.vmem [shape: f32[1,128], index: 6, kind: input, shape index: {}]   ;;  %s530_s7 = inlined_call_operand.hbm [shape: f32[16,128], index: 7, kind: output, shape index: {}]  }
   0x1   :  { %s12_s26 = sshll.u32 %s523_s0, 4  ;;  %s13_s26 = int_to_ptr.vmem [resolvable:$true] %s12_s26 }
   0x2   :  { %s362_s27 = scalar_lea.vmem %s13_s26, 16  ;;  %p367_p1 = scmp.lt.s32.totalorder %s13_s26, %s13_s26 }
   0x3   :  { %p363_p0 = scmp.ne.s32.totalorder %s13_s26, %s362_s27  ;;  %p368_p2 = scmp.lt.s32.totalorder %s362_s27, %s362_s27 }
   0x5   :  { %p369_p3 = por %p368_p2, %p367_p1 }
   0x7   :  { %p370_p4 = pnand %p369_p3, %p363_p0 }
   0x9   :  { %373 = shalt.err (!%p370_p4)  }
   0xa   :  { %s430_s28 = smov [#allocation5]  }
   0xb   :  { %15 = dma.vmem_to_smem %s13_s26, 16, %s430_s28, [#allocation4] }
   0xc   :  { %420 = dma.done.wait [#allocation4], 16 }
   0xd   :  { %421 = vsyncadd [#allocation4], 4294967280 }
   0xe   :  { %17 = sfence }
   0xf   :  { %18 = vsyncpa [#allocation7], 0  ;;  %s480_s29 = smov 0  }
  0x10 LB: > { %s47_s0 = sld [smem:[#allocation5 + %s428_s29]]  ;;  %s50_s30 = scalar_lea.vmem [#allocation2], %s428_s29  ;;  %s428_s29 = sphi %s480_s29, %s46_s29  }
  0x11   : > { %s58_s8 = sshll.u32 %s50_s30, 4  ;;  %s376_s16 = scalar_lea.hbm %s524_s1, 1024  ;;  %s59_s8 = int_to_ptr.vmem [resolvable:$true] %s58_s8 }
  0x16   : > { %s318_s9 = sshll.u32 %s47_s0, 4 }
  0x17   : > { %s49_s12 = scalar_lea.hbm %s524_s1, %s318_s9 }
  0x18   : > { %s374_s13 = scalar_lea.hbm %s49_s12, 16  ;;  %p377_p6 = scmp.lt.s32.totalorder %s49_s12, %s524_s1 }
  0x19   : > { %p375_p5 = scmp.ne.s32.totalorder %s49_s12, %s374_s13  ;;  %p378_p7 = scmp.lt.s32.totalorder %s376_s16, %s374_s13 }
  0x1b   : > { %p379_p8 = por %p378_p7, %p377_p6 }
  0x1d   : > { %p380_p9 = pnand %p379_p8, %p375_p5 }
  0x1f   : > { %383 = shalt.err (!%p380_p9)  }
  0x20   : > { %s384_s19 = scalar_lea.vmem %s59_s8, 16  ;;  %s431_s20 = smov [#allocation2]  }
  0x21   : > { %p385_p10 = scmp.ne.s32.totalorder %s59_s8, %s384_s19  ;;  %s386_s21 = sshll.u32 %s431_s20, 4  ;;  %s387_s21 = int_to_ptr.vmem [resolvable:$false] %s386_s21 }
  0x22   : > { %s388_s22 = scalar_lea.vmem %s387_s21, 512  ;;  %p389_p11 = scmp.lt.s32.totalorder %s59_s8, %s387_s21 }
  0x23   : > { %p390_p12 = scmp.lt.s32.totalorder %s388_s22, %s384_s19 }
  0x25   : > { %p391_p13 = por %p390_p12, %p389_p11 }
  0x27   : > { %p392_p0 = pnand %p391_p13, %p385_p10 }
  0x29   : > { %395 = shalt.err (!%p392_p0)  }
  0x2a   : > { %61 = dma.hbm_to_vmem [thread:$0]  %s49_s12, 16, %s59_s8, [#allocation3] }
  0x2b   : > { %s46_s29 = sadd.s32 1, %s428_s29  }
  0x2c   : > { %p43_p1 = scmp.ge.s32.totalorder %s46_s29, 16  }
  0x2d   :  { %v105_v0 = vld [vmem:[%s525_s2] sm:$0xff] (%p43_p1)  ;;  %v122_v1 = vld [vmem:[%s526_s3 + $0x8] sm:$0xff] (%p43_p1)  ;;  %v432_v2 = vmov (%p43_p1), 0   ;;  %v107_v5 = vlaneseq (%p43_p1)  ;;  %vm123_vm0 = vcmask (%p43_p1), 130048   ;;  %v433_v8 = vmov (%p43_p1), 0.0  }
  0x2e   :  { %45 = sbr.rel (!%p43_p1) target bundleno = 16 (0x10), region = 78  ;;  %357 = vset.pattern.permute.xlu0 (%p43_p1), %v432_v2  ;;  %336 = vmatprep.subr.mxu0 (%p43_p1), %v122_v1  ;;  %v121_v3 = vld [vmem:[%s526_s3] sm:$0xff] (%p43_p1)  ;;  %v106_v4 = vld [vmem:[%s525_s2 + $0x8] sm:$0xff] (%p43_p1) }
  0x2f   :  { %110 = vperm.xlu0 (%p43_p1), %357, %v105_v0   ;;  %337 = vmatpush3.msra.mxu0 (%p43_p1), %v122_v1  ;;  %v108_v6 = vand.u32 (%p43_p1), 127, %v107_v5 }
  0x30   :  { %338 = vmatprep.subr.mxu0 (%p43_p1), %v121_v3 }
  0x31   :  { %339 = vmatpush3.msra.mxu0 (%p43_p1), %v121_v3 }
  0x33   :  { %113 = vperm.xlu0 %357, %v106_v4  }
  0xaa   :  { %v111_v7 = vpop.permute.xlu0 %110 }
  0xab   :  { %vm115_vm1 = vcmp.eq.s32.totalorder %v111_v7, %v108_v6 }
  0xac   :  { %v321_v9 = vsel %vm115_vm1, 1.0, %v433_v8 }
  0xad   :  { %340 = vmatprep.mubr.msk.f32.mxu0 %vm123_vm0, %v321_v9 }
  0xae   :  { %v114_v10 = vpop.permute.xlu0 %113 }
  0xaf   :  { %vm116_vm2 = vcmp.eq.s32.totalorder %v114_v10, %v108_v6 }
  0xb0   :  { %v322_v11 = vsel %vm116_vm2, 1.0, %v433_v8 }
  0xb1   :  { %341 = vmatmul.mubr.msk.f32.vlgmr.msra.gmra.mxu0 %vm123_vm0, %v322_v11 }
 0x171   :  { %v342_v12 = vpop.f32.mrf.mxu0 }
 0x173   :  { %v196_v13 = vpop.f32.mrf.mxu0 }
 0x174   :  { %422 = dma.done.wait [#allocation3], 256 }
 0x175   :  { %423 = vsyncadd [#allocation3], 4294967040  ;;  %v211_v14 = vld [vmem:[#allocation2] sm:$0xff]  ;;  %v212_v16 = vld [vmem:[#allocation2 + $0x8] sm:$0xff]  ;;  %s434_s9 = smov [#allocation6]  }
 0x176   :  { %v325_v15 = vld [vmem:[%s527_s4] ss:$0 sm:$0xff]  ;;  %v213_v17 = vadd.f32 %v211_v14, %v196_v13  ;;  %v214_v18 = vadd.f32 %v342_v12, %v212_v16  ;;  %s272_s10 = sshll.u32 %s434_s9, 4  ;;  %s273_s10 = int_to_ptr.vmem [resolvable:$true] %s272_s10 }
 0x177   :  { %v326_v36 = vld [vmem:[%s528_s5] ss:$0 sm:$0xff]  ;;  %s396_s11 = scalar_lea.vmem %s273_s10, 256  ;;  %p401_p3 = scmp.lt.s32.totalorder %s273_s10, %s273_s10 }
 0x178   :  { %v222_v19 = vadd.f32 %v325_v15, %v213_v17  ;;  %v223_v20 = vadd.f32 %v325_v15, %v214_v18  ;;  %v327_v38 = vld [vmem:[%s529_s6] ss:$0 sm:$0xff]  ;;  %p397_p2 = scmp.ne.s32.totalorder %s273_s10, %s396_s11  ;;  %p402_p4 = scmp.lt.s32.totalorder %s396_s11, %s396_s11 }
 0x17a   :  { %224 = vadd.xlane.f32.xlu0 %v222_v19  ;;  %p403_p5 = por %p402_p4, %p401_p3 }
 0x17c   :  { %p404_p6 = pnand %p403_p5, %p397_p2 }
 0x17e   :  { %226 = vadd.xlane.f32.xlu0 %v223_v20 }
 0x203   :  { %v225_v21 = vpop.xlane.xlu0 %224 }
 0x204   :  { %v229_v22 = vmul.f32 0.0078125, %v225_v21 }
 0x206   :  { %v231_v23 = vsub.f32 %v222_v19, %v229_v22 }
 0x207   :  { %v227_v24 = vpop.xlane.xlu0 %226 }
 0x208   :  { %v230_v25 = vmul.f32 0.0078125, %v227_v24  ;;  %v233_v26 = vmul.f32 %v231_v23, %v231_v23 }
 0x20a   :  { %v232_v27 = vsub.f32 %v223_v20, %v230_v25  ;;  %235 = vadd.xlane.f32.xlu1 %v233_v26 }
 0x20c   :  { %v234_v28 = vmul.f32 %v232_v27, %v232_v27 }
 0x20e   :  { %237 = vadd.xlane.f32.xlu1 %v234_v28 }
 0x293   :  { %v236_v29 = vpop.xlane.xlu1 %235 }
 0x294   :  { %v239_v30 = vmul.f32 0.0078125, %v236_v29 }
 0x296   :  { %v241_v31 = vadd.f32 1e-05, %v239_v30 }
 0x297   :  { %v238_v32 = vpop.xlane.xlu1 %237 }
 0x298   :  { %358 = vrsqrt.f32 %v241_v31  ;;  %v240_v33 = vmul.f32 0.0078125, %v238_v32 }
 0x29a   :  { %v242_v34 = vadd.f32 1e-05, %v240_v33 }
 0x29c   :  { %360 = vrsqrt.f32 %v242_v34 }
 0x2a5   :  { %v359_v35 = vpop.eup %358 }
 0x2a6   :  { %v245_v37 = vmul.f32 %v359_v35, %v231_v23 }
 0x2a8   :  { %v254_v39 = vmul.f32 %v326_v36, %v245_v37 }
 0x2a9   :  { %v361_v40 = vpop.eup %360 }
 0x2aa   :  { %v246_v41 = vmul.f32 %v361_v40, %v232_v27  ;;  %v263_v42 = vadd.f32 %v327_v38, %v254_v39 }
 0x2ac   :  { %v255_v43 = vmul.f32 %v326_v36, %v246_v41  ;;  %265 = vst [vmem:[#allocation6] sm:$0xff] %v263_v42 }
 0x2ae   :  { %v264_v44 = vadd.f32 %v327_v38, %v255_v43 }
 0x2b0   :  { %266 = vst [vmem:[#allocation6 + $0x8] sm:$0xff] %v264_v44 }
 0x2b1   :  { %407 = shalt.err (!%p404_p6)
}
 0x2b2   :  { %s435_s5 = smov 128   ;;  %s436_s6 = smov 8  }
 0x2b3   :  { %278 = dma.vmem_to_hbm [thread:$0]  %s273_s10, 256, %s530_s7, [#allocation7], %s435_s5, %s435_s5, %s436_s6  }
 0x2b4   :  { %424 = dma.done.wait [#allocation7], 256  }
 0x2b5   :  { %425 = vsyncadd [#allocation7], 4294967040 }
 0x2b6   :  { %282 = vsyncpa [#allocation7], 1 }
 0x2b7   :  { %283 = vsyncmov [#allocation3] }
 0x2ba   :  { %s284_s14 = vpop.sfrf %283 }
 0x2bb   :  { %p328_p7 = scmp.ne.s32.totalorder %s284_s14, 0 }
 0x2bd   :  { %288 = shalt.err (%p328_p7)  }
 0x2be   :  { %290 = vsyncmov [#allocation3 + $0x1] }
 0x2c1   :  { %s291_s15 = vpop.sfrf %290 }
 0x2c2   :  { %p329_p8 = scmp.ne.s32.totalorder %s291_s15, 0 }
 0x2c4   :  { %295 = shalt.err (%p329_p8)  }

</bundles_post_ra>
